<compile_context>
chip_gen: v7x
topology: tpu7x:2x2x1
jax: 0.10.0
libtpu: 0.0.40
codegen_flags: <defaults>
</compile_context>

<pallas_src>
import jax
import jax.numpy as jnp
import numpy as np
from jax import lax
from jax.experimental import pallas as pl
from jax.experimental.pallas import tpu as pltpu

_NEG_SLOPE = 0.01  # torch.nn.LeakyReLU default negative_slope


def _leaky(x):
    # For 0 < slope < 1: leaky_relu(x) == max(x, slope * x)
    return jnp.maximum(x, _NEG_SLOPE * x)


def _nan_to_num(x):
    # Matches torch.nan_to_num defaults: nan->0, +inf->f32 max, -inf->f32 min.
    big = jnp.float32(jnp.finfo(jnp.float32).max)
    x = jnp.where(x != x, jnp.float32(0.0), x)
    x = jnp.where(x == jnp.inf, big, x)
    x = jnp.where(x == -jnp.inf, -big, x)
    return x


def _round_up(x, m):
    return ((x + m - 1) // m) * m


def _pick_tile(total, candidates):
    for c in candidates:
        if total % c == 0:
            return c
    return total


# -----------------------------------------------------------------------------
# Embedding kernel:  emb = feat @ w_aug   and   proj_row[0, j] = feat_j . v
# (one wide MXU matmul per feature matrix instead of several skinny launches)
# -----------------------------------------------------------------------------
def _embed_kernel(feat_ref, w_ref, v_ref, emb_ref, proj_ref):
    f = feat_ref[...]
    emb_ref[...] = jnp.dot(f, w_ref[...], preferred_element_type=jnp.float32)
    # (1, F) x (TR, F) contracted over F -> (1, TR) row vector (no transpose).
    proj_ref[...] = lax.dot_general(v_ref[...], f, (((1,), (1,)), ((), ())),
                                    preferred_element_type=jnp.float32)


def _embed(feat_pad, w_aug, v_row, tile_r):
    rp, f = feat_pad.shape
    c = w_aug.shape[1]
    emb, proj = pl.pallas_call(
        _embed_kernel,
        out_shape=(jax.ShapeDtypeStruct((rp, c), jnp.float32),
                   jax.ShapeDtypeStruct((1, rp), jnp.float32)),
        grid_spec=pltpu.PrefetchScalarGridSpec(
            num_scalar_prefetch=0,
            grid=(rp // tile_r,),
            in_specs=[pl.BlockSpec((tile_r, f), lambda i: (i, 0)),
                      pl.BlockSpec((f, c), lambda i: (0, 0)),
                      pl.BlockSpec((1, f), lambda i: (0, 0))],
            out_specs=[pl.BlockSpec((tile_r, c), lambda i: (i, 0)),
                       pl.BlockSpec((1, tile_r), lambda i: (0, i))]),
        compiler_params=pltpu.CompilerParams(dimension_semantics=("parallel",)),
    )(feat_pad, w_aug, v_row)
    return emb, proj


# -----------------------------------------------------------------------------
# Aggregation kernel: grid = (row tiles [parallel], column tiles [arbitrary]).
# Online accumulation of [numerator | attention rowsum] (single MXU matmul per
# path, rowsum folded via a ones column) plus adjacency degree; divides and
# activations deferred to the finalize step.
# -----------------------------------------------------------------------------
def _make_agg_kernel(kn_blocks, ke_blocks, kmax, dn, de):
    def kernel(ann_ref, aen_ref, s_ref, zc_ref, t_ref, hc_ref, u_ref,
               out_ref, acc_n, acc_e, deg_n, deg_e):
        k = pl.program_id(1)

        @pl.when(k == 0)
        def _init():
            acc_n[...] = jnp.zeros_like(acc_n)
            acc_e[...] = jnp.zeros_like(acc_e)
            deg_n[...] = jnp.zeros_like(deg_n)
            deg_e[...] = jnp.zeros_like(deg_e)

        # ---- node <- node contribution of this column tile ----
        def _node_part():
            ann = ann_ref[...].astype(jnp.float32)                  # (TM, TKN)
            # fused: exp(leaky(s_i + t_j)) * adj, stays in vregs
            w = jnp.exp(_leaky(s_ref[:, 0:1] + t_ref[...])) * ann
            deg_n[...] += jnp.sum(ann, axis=1, keepdims=True)
            # zc = [z | 1]: one MXU matmul yields numerator AND softmax rowsum
            acc_n[...] += jnp.dot(w, zc_ref[...],
                                  preferred_element_type=jnp.float32)

        # ---- node <- edge contribution of this column tile ----
        def _edge_part():
            aen = aen_ref[...].astype(jnp.float32)                  # (TM, TKE)
            w = jnp.exp(_leaky(s_ref[:, 1:2] + u_ref[...])) * aen
            deg_e[...] += jnp.sum(aen, axis=1, keepdims=True)
            acc_e[...] += jnp.dot(w, hc_ref[...],
                                  preferred_element_type=jnp.float32)

        # Skip the scf.if entirely when a path covers the whole reduction axis.
        if kn_blocks == kmax:
            _node_part()
        else:
            pl.when(k < kn_blocks)(_node_part)
        if ke_blocks == kmax:
            _edge_part()
        else:
            pl.when(k < ke_blocks)(_edge_part)

        # ---- finalize: deferred row-wise divides on the small (TM, D) results ----
        @pl.when(k == kmax - 1)
        def _finalize():
            num_n = acc_n[:, 0:dn]
            num_e = acc_e[:, 0:de]
            den_n = acc_n[:, dn:dn + 1] * deg_n[...]   # rowsum(w) * degree
            den_e = acc_e[:, de:de + 1] * deg_e[...]
            # zero-degree rows: 0 / 0 -> NaN -> 0 (matches the torch path)
            res_n = _leaky(_nan_to_num(num_n / den_n))
            res_e = _leaky(_nan_to_num(num_e / den_e))
            out_ref[...] = jnp.zeros_like(out_ref)
            out_ref[:, 0:dn] = res_n
            out_ref[:, dn:dn + de] = res_e

    return kernel


def node_level_attention_pallas(node_features, edge_features, adj_nn, adj_en,
                                weight_node, weight_edge, a_node, a_edge):
    f32 = jnp.float32
    n, fn = node_features.shape
    e, fe = edge_features.shape
    dn = weight_node.shape[1]
    de = weight_edge.shape[1]

    # ---- padded sizes & tile choices ----
    n_pad = _round_up(n, 128)
    e_pad = _round_up(e, 128)
    tm = _pick_tile(n_pad, (256, 128))         # row tile (parallel, megacore)
    tkn = _pick_tile(n_pad, (512, 256, 128))   # node-column (reduction) tile
    tke = _pick_tile(e_pad, (512, 256, 128))   # edge-column (reduction) tile
    dout = dn + de
    dout_pad = _round_up(dout, 128)

    # ---- fold attention projections into the weights (parameter-sized glue) ----
    wn = weight_node.astype(f32)
    we = weight_edge.astype(f32)
    an1, an2 = a_node[:dn].astype(f32), a_node[dn:].astype(f32)
    ae1, ae2 = a_edge[:dn].astype(f32), a_edge[dn:].astype(f32)
    wn_aug = jnp.concatenate(
        [wn, (wn @ an1)[:, None], (wn @ ae1)[:, None]], axis=1)   # (Fn, Dn+2)
    vt_row = (wn @ an2)[None, :]   # t_j = nf_j . (Wn a_n2) == z_j . a_n2
    vu_row = (we @ ae2)[None, :]   # u_j = ef_j . (We a_e2) == h_j . a_e2

    # ---- zero-pad inputs; adjacency streamed as bf16 (0/1 exact, half HBM bytes) ----
    nf_pad = jnp.pad(node_features.astype(f32), ((0, n_pad - n), (0, 0)))
    ef_pad = jnp.pad(edge_features.astype(f32), ((0, e_pad - e), (0, 0)))
    ann_pad = jnp.pad(adj_nn.astype(jnp.bfloat16),
                      ((0, n_pad - n), (0, n_pad - n)))
    aen_pad = jnp.pad(adj_en.astype(jnp.bfloat16),
                      ((0, n_pad - n), (0, e_pad - e)))

    # ---- embedding kernels: 2 wide MXU matmuls instead of 6 skinny launches ----
    z_aug, t_row = _embed(nf_pad, wn_aug, vt_row, tkn)  # (n_pad, Dn+2), (1, n_pad)
    h_emb, u_row = _embed(ef_pad, we, vu_row, tke)      # (e_pad, De),   (1, e_pad)

    # Column-side operands augmented with a ones column so the aggregation
    # matmul also produces the attention-weight row sums (no XLU reduce).
    zc = jnp.concatenate([z_aug[:, :dn], jnp.ones((n_pad, 1), f32)], axis=1)
    hc = jnp.concatenate([h_emb, jnp.ones((e_pad, 1), f32)], axis=1)
    s_cols = z_aug[:, dn:dn + 2]    # per-row projections [s_n | s_e]

    kn = n_pad // tkn
    ke = e_pad // tke
    kmax = max(kn, ke)

    out_pad = pl.pallas_call(
        _make_agg_kernel(kn, ke, kmax, dn, de),
        out_shape=jax.ShapeDtypeStruct((n_pad, dout_pad), f32),
        grid_spec=pltpu.PrefetchScalarGridSpec(
            num_scalar_prefetch=0,
            grid=(n_pad // tm, kmax),
            in_specs=[
                # adjacency tiles (clamped on the shorter reduction axis)
                pl.BlockSpec((tm, tkn), lambda i, k: (i, jnp.minimum(k, kn - 1))),
                pl.BlockSpec((tm, tke), lambda i, k: (i, jnp.minimum(k, ke - 1))),
                # per-row projections [s_n | s_e]
                pl.BlockSpec((tm, 2), lambda i, k: (i, 0)),
                # column-side operands (embedding | ones) and row vectors t, u
                pl.BlockSpec((tkn, dn + 1), lambda i, k: (jnp.minimum(k, kn - 1), 0)),
                pl.BlockSpec((1, tkn), lambda i, k: (0, jnp.minimum(k, kn - 1))),
                pl.BlockSpec((tke, de + 1), lambda i, k: (jnp.minimum(k, ke - 1), 0)),
                pl.BlockSpec((1, tke), lambda i, k: (0, jnp.minimum(k, ke - 1))),
            ],
            out_specs=pl.BlockSpec((tm, dout_pad), lambda i, k: (i, 0)),
            scratch_shapes=[
                pltpu.VMEM((tm, dn + 1), f32), pltpu.VMEM((tm, de + 1), f32),
                pltpu.VMEM((tm, 1), f32), pltpu.VMEM((tm, 1), f32),
            ]),
        compiler_params=pltpu.CompilerParams(
            dimension_semantics=("parallel", "arbitrary")),
    )(ann_pad, aen_pad, s_cols, zc, t_row, hc, u_row)

    return out_pad[:n, :dout]


def reference_forward(nf, ef, ann, aen, wn, we, a_n, a_e):
    """Literal JAX transcription of the PyTorch forward (tile/reshape/cat)."""
    hi = jax.lax.Precision.HIGHEST
    N = nf.shape[0]
    E = ef.shape[0]
    z = jnp.dot(nf, wn, precision=hi)
    h = jnp.dot(ef, we, precision=hi)
    Dn = z.shape[1]
    De = h.shape[1]

    cat_n = jnp.concatenate([jnp.tile(z, (1, N)).reshape(N, N, Dn),
                             jnp.tile(z, (N, 1)).reshape(N, N, Dn)], axis=2)
    att_n = _leaky(jnp.einsum("ijk,k->ij", cat_n, a_n, precision=hi))
    ic_n = jnp.exp(att_n) / (jnp.exp(att_n) * ann).sum(axis=1)[:, None] * ann
    denom_n = ann.sum(axis=1)
    emb_prop_n = jnp.tile(z, (N, 1)).reshape(N, N, Dn)
    summ_n = ic_n.reshape(ic_n.shape[1], ic_n.shape[0], 1) * emb_prop_n
    out_n = _leaky(jnp.nan_to_num(summ_n.sum(axis=1) / denom_n[:, None]))

    cat_e = jnp.concatenate([jnp.tile(z, (1, E)).reshape(N, E, Dn),
                             jnp.tile(h, (N, 1)).reshape(N, E, De)], axis=2)
    att_e = _leaky(jnp.einsum("ijk,k->ij", cat_e, a_e, precision=hi))
    ic_e = jnp.nan_to_num(
        jnp.exp(att_e) / (jnp.exp(att_e) * aen).sum(axis=1)[:, None] * aen)
    denom_e = aen.sum(axis=1)
    emb_prop_e = jnp.tile(h, (N, 1)).reshape(N, E, De)
    summ_e = ic_e.reshape(ic_e.shape[0], ic_e.shape[1], 1) * emb_prop_e
    out_e = _leaky(jnp.nan_to_num(summ_e.sum(axis=1) / denom_e[:, None]))

    return jnp.concatenate([out_n, out_e], axis=1)


if __name__ == "__main__":
    key = jax.random.PRNGKey(0)
    N, E = 16, 24                 # num nodes, num edges
    Fn, Fe = 8, 6                 # node / edge feature sizes
    Dn, De = 16, 8                # node / edge embedding sizes
    ks = jax.random.split(key, 8)

    node_features = jax.random.normal(ks[0], (N, Fn), jnp.float32)
    edge_features = jax.random.normal(ks[1], (E, Fe), jnp.float32)
    adj_nn = (jax.random.uniform(ks[2], (N, N)) < 0.4).astype(jnp.float32)
    adj_nn = jnp.maximum(adj_nn, jnp.eye(N, dtype=jnp.float32))   # no isolated nodes
    adj_en = (jax.random.uniform(ks[3], (N, E)) < 0.3).astype(jnp.float32)
    adj_en = adj_en.at[0].set(0.0)                                # exercises nan_to_num path

    # Deterministic parameter init matching __init__:
    # xavier_uniform_ for the weight matrices, normal(0,1) for the attention vectors.
    lim_n = float(np.sqrt(6.0 / (Fn + Dn)))
    lim_e = float(np.sqrt(6.0 / (Fe + De)))
    weight_node = jax.random.uniform(ks[4], (Fn, Dn), jnp.float32, -lim_n, lim_n)
    weight_edge = jax.random.uniform(ks[5], (Fe, De), jnp.float32, -lim_e, lim_e)
    a_node = jax.random.normal(ks[6], (2 * Dn,), jnp.float32)
    a_edge = jax.random.normal(ks[7], (Dn + De,), jnp.float32)

    out = node_level_attention_pallas(node_features, edge_features, adj_nn, adj_en,
                                      weight_node, weight_edge, a_node, a_edge)
    out = jax.block_until_ready(out)

    ref = reference_forward(node_features, edge_features, adj_nn, adj_en,
                            weight_node, weight_edge, a_node, a_edge)
    np.testing.assert_allclose(np.asarray(out), np.asarray(ref), rtol=3e-2, atol=1e-3)

    print("KERNEL_OK")
</pallas_src>

<mosaic_0001>
module attributes {stable_mosaic.version = 11 : i64} {
  func.func @_embed_kernel(%arg0: i32, %arg1: memref<128x8xf32, #tpu.memory_space<vmem>>, %arg2: memref<8x18xf32, #tpu.memory_space<vmem>>, %arg3: memref<1x8xf32, #tpu.memory_space<vmem>>, %arg4: memref<128x18xf32, #tpu.memory_space<vmem>>, %arg5: memref<1x128xf32, #tpu.memory_space<vmem>>) attributes {dimension_semantics = [#tpu.dimension_semantics<parallel>], iteration_bounds = array<i64: 1>, scalar_prefetch = 0 : i64, scratch_operands = 0 : i64, tpu.core_type = #tpu.core_type<tc>, window_params = [{transform_indices = @transform_0, window_bounds = array<i64: 128, 8>}, {pipeline_mode = #tpu.pipeline_mode<synchronous>, transform_indices = @transform_1, window_bounds = array<i64: 8, 18>}, {pipeline_mode = #tpu.pipeline_mode<synchronous>, transform_indices = @transform_2, window_bounds = array<i64: 1, 8>}, {transform_indices = @transform_3, window_bounds = array<i64: 128, 18>}, {transform_indices = @transform_4, window_bounds = array<i64: 1, 128>}]} {
    %c0 = arith.constant 0 : index
    %c0_0 = arith.constant 0 : index
    %0 = vector.load %arg1[%c0, %c0_0] : memref<128x8xf32, #tpu.memory_space<vmem>>, vector<128x8xf32>
    %c0_1 = arith.constant 0 : index
    %c0_2 = arith.constant 0 : index
    %1 = vector.load %arg2[%c0_1, %c0_2] : memref<8x18xf32, #tpu.memory_space<vmem>>, vector<8x18xf32>
    %cst = arith.constant dense<0.000000e+00> : vector<128x18xf32>
    %2 = tpu.matmul %0, %1, %cst {dimension_numbers = #tpu.dot_dimension_numbers<[1], [0], [0], [1], [0, 0, 1, 1], [], []>} : vector<128x8xf32>, vector<8x18xf32>, vector<128x18xf32> -> vector<128x18xf32>
    %c0_3 = arith.constant 0 : index
    %c0_4 = arith.constant 0 : index
    %3 = vector.load %arg4[%c0_3, %c0_4] : memref<128x18xf32, #tpu.memory_space<vmem>>, vector<128x18xf32>
    tpu.vector_store %arg4[%c0_3, %c0_4], %2 {strides = array<i32>} : memref<128x18xf32, #tpu.memory_space<vmem>>, vector<128x18xf32>,
    %c0_5 = arith.constant 0 : index
    %c0_6 = arith.constant 0 : index
    %4 = vector.load %arg3[%c0_5, %c0_6] : memref<1x8xf32, #tpu.memory_space<vmem>>, vector<1x8xf32>
    %cst_7 = arith.constant dense<0.000000e+00> : vector<1x128xf32>
    %5 = tpu.matmul %4, %0, %cst_7 {dimension_numbers = #tpu.dot_dimension_numbers<[1], [1], [0], [0], [0, 0, 1, 0], [], []>} : vector<1x8xf32>, vector<128x8xf32>, vector<1x128xf32> -> vector<1x128xf32>
    %c0_8 = arith.constant 0 : index
    %c0_9 = arith.constant 0 : index
    %6 = vector.load %arg5[%c0_8, %c0_9] : memref<1x128xf32, #tpu.memory_space<vmem>>, vector<1x128xf32>
    tpu.vector_store %arg5[%c0_8, %c0_9], %5 {strides = array<i32>} : memref<1x128xf32, #tpu.memory_space<vmem>>, vector<1x128xf32>,
    return
  }
  func.func @transform_0(%arg0: i32) -> (i32, i32) {
    %c0_i32 = arith.constant 0 : i32
    %c0_i32_0 = arith.constant 0 : i32
    return %arg0, %c0_i32 : i32, i32
  }
  func.func @transform_1(%arg0: i32) -> (i32, i32) {
    %c0_i32 = arith.constant 0 : i32
    %c0_i32_0 = arith.constant 0 : i32
    %c0_i32_1 = arith.constant 0 : i32
    return %c0_i32, %c0_i32_0 : i32, i32
  }
  func.func @transform_2(%arg0: i32) -> (i32, i32) {
    %c0_i32 = arith.constant 0 : i32
    %c0_i32_0 = arith.constant 0 : i32
    %c0_i32_1 = arith.constant 0 : i32
    return %c0_i32, %c0_i32_0 : i32, i32
  }
  func.func @transform_3(%arg0: i32) -> (i32, i32) {
    %c0_i32 = arith.constant 0 : i32
    %c0_i32_0 = arith.constant 0 : i32
    return %arg0, %c0_i32 : i32, i32
  }
  func.func @transform_4(%arg0: i32) -> (i32, i32) {
    %c0_i32 = arith.constant 0 : i32
    %c0_i32_0 = arith.constant 0 : i32
    return %c0_i32, %arg0 : i32, i32
  }
}

</mosaic_0001>

<bundles_post_ra>
// kernel: tpu_custom_call.1
= control target key start
LH: loop header
LB: loop body
LE: loop exit
PB: predicated region body
PF: predicated region fallthrough
CT: control target
= control target key end

     0   :  { %vm34_vm0 = vcmask 64512   ;;  %v526_v2 = vmov 0.0|0.0   ;;  %vm527_vm2 = vmmov 0   ;;  %v528_v5 = vmov 0.0   ;;  %s724_s0 = inlined_call_operand.vmem [shape: f32[128,8], index: 0, kind: input, shape index: {}]   ;;  %s725_s1 = inlined_call_operand.vmem [shape: f32[8,18], index: 1, kind: input, shape index: {}]   ;;  %s726_s2 = inlined_call_operand.vmem [shape: f32[1,8], index: 2, kind: input, shape index: {}]   ;;  %s727_s3 = inlined_call_operand.vmem [shape: f32[128,18], index: 3, kind: output, shape index: {0}]   ;;  %s728_s4 = inlined_call_operand.hbm [shape: f32[1,128], index: 4, kind: output, shape index: {1}]  }
   0x1   :  { %v17_v0 = vld [vmem:[%s724_s0] sm:$0xff]  ;;  %v18_v1 = vld [vmem:[%s724_s0 + $0x8] sm:$0xff]  ;;  %466 = vmatprep.subr.bf16.mxu1 %v526_v2  ;;  %vm563_vm1 = vmpackc.low %vm34_vm0, %vm34_vm0  ;;  %463 = vmatprep.mubr.msk.f32.mxu1 %vm527_vm2, %v528_v5 }
   0x2   :  { %v467_v3 = vpack.c.bf16 %v18_v1, %v17_v0  ;;  %407 = vmatprep.mubr.msk.f32.mxu0 %vm34_vm0, %v17_v0  ;;  %v33_v6 = vld [vmem:[%s725_s1] sm:$0xff]  ;;  %v19_v7 = vld [vmem:[%s724_s0 + $0x10] sm:$0xff]  ;;  %v20_v8 = vld [vmem:[%s724_s0 + $0x18] sm:$0xff] }
   0x3   :  { %405 = vmatprep.subr.mxu0 %v33_v6 }
   0x4   :  { %469 = vmatpush3.bf16.xpose.msk.msra.mxu1 %vm563_vm1, %v467_v3  ;;  %406 = vmatpush3.msra.mxu0 %v33_v6 }
   0x5   :  { %470 = vmatprep.subr.bf16.mxu1 %v526_v2  ;;  %408 = vmatmul.mubr.msk.f32.vlgmr.msra.gmra.mrb[0].mxu0 %vm34_vm0, %v18_v1 }
   0x6   :  { %10 = vsyncpa [#allocation3], 0  ;;  %v471_v9 = vpack.c.bf16 %v20_v8, %v19_v7  ;;  %410 = vmatprep.mubr.msk.f32.mxu0 %vm34_vm0, %v19_v7  ;;  %v21_v10 = vld [vmem:[%s724_s0 + $0x20] sm:$0xff]  ;;  %v22_v11 = vld [vmem:[%s724_s0 + $0x28] sm:$0xff]  ;;  %vm228_vm3 = vcmask 146432   ;;  %s529_s26 = smov [#allocation2]  }
   0x7   :  { %v23_v12 = vld [vmem:[%s724_s0 + $0x30] sm:$0xff]  ;;  %v475_v13 = vpack.c.bf16 %v22_v11, %v21_v10  ;;  %v24_v14 = vld [vmem:[%s724_s0 + $0x38] sm:$0xff]  ;;  %v25_v15 = vld [vmem:[%s724_s0 + $0x40] sm:$0xff]  ;;  %s328_s1 = sshll.u32 %s529_s26, 4  ;;  %s329_s1 = int_to_ptr.vmem [resolvable:$true] %s328_s1 }
   0x8   :  { %v26_v16 = vld [vmem:[%s724_s0 + $0x48] sm:$0xff]  ;;  %v27_v17 = vld [vmem:[%s724_s0 + $0x50] sm:$0xff]  ;;  %v479_v18 = vpack.c.bf16 %v24_v14, %v23_v12  ;;  %v28_v19 = vld [vmem:[%s724_s0 + $0x58] sm:$0xff]  ;;  %s502_s27 = scalar_lea.vmem %s329_s1, 16  ;;  %p507_p1 = scmp.lt.s32.totalorder %s329_s1, %s329_s1 }
   0x9   :  { %411 = vmatmul.mubr.msk.f32.gmra.mrb[2].mxu0 %vm34_vm0, %v20_v8  ;;  %v29_v20 = vld [vmem:[%s724_s0 + $0x60] sm:$0xff]  ;;  %v30_v21 = vld [vmem:[%s724_s0 + $0x68] sm:$0xff]  ;;  %v31_v22 = vld [vmem:[%s724_s0 + $0x70] sm:$0xff]  ;;  %v483_v23 = vpack.c.bf16 %v26_v16, %v25_v15  ;;  %v487_v25 = vpack.c.bf16 %v28_v19, %v27_v17  ;;  %p503_p0 = scmp.ne.s32.totalorder %s329_s1, %s502_s27 }
   0xa   :  { %413 = vmatprep.mubr.msk.f32.mxu0 %vm34_vm0, %v21_v10  ;;  %v32_v24 = vld [vmem:[%s724_s0 + $0x78] sm:$0xff]  ;;  %v491_v26 = vpack.c.bf16 %v30_v21, %v29_v20  ;;  %v245_v28 = vld [vmem:[%s726_s2] sm:$0x1]  ;;  %s506_s2 = scalar_lea.vmem %s329_s1, 32 }
   0xb   :  { %v495_v27 = vpack.c.bf16 %v32_v24, %v31_v22  ;;  %p508_p2 = scmp.lt.s32.totalorder %s506_s2, %s502_s27 }
   0xc   :  { %473 = vmatpush3.bf16.xpose.msk.msra.mxu1 %vm563_vm1, %v471_v9 }
   0xd   :  { %474 = vmatprep.subr.bf16.mxu1 %v526_v2  ;;  %414 = vmatmul.mubr.msk.f32.gmra.mrb[4].mxu0 %vm34_vm0, %v22_v11  ;;  %p509_p3 = por %p508_p2, %p507_p1 }
   0xe   :  { %416 = vmatprep.mubr.msk.f32.mxu0 %vm34_vm0, %v23_v12 }
   0xf   :  { %p510_p4 = pnand %p509_p3, %p503_p0 }
  0x11   :  { %417 = vmatmul.mubr.msk.f32.gmra.mrb[6].mxu0 %vm34_vm0, %v24_v14 }
  0x12   :  { %419 = vmatprep.mubr.msk.f32.mxu0 %vm34_vm0, %v25_v15 }
  0x14   :  { %477 = vmatpush3.bf16.xpose.msk.msra.mxu1 %vm563_vm1, %v475_v13 }
  0x15   :  { %478 = vmatprep.subr.bf16.mxu1 %v526_v2  ;;  %420 = vmatmul.mubr.msk.f32.gmra.mrb[8].mxu0 %vm34_vm0, %v26_v16 }
  0x16   :  { %422 = vmatprep.mubr.msk.f32.mxu0 %vm34_vm0, %v27_v17 }
  0x19   :  { %423 = vmatmul.mubr.msk.f32.gmra.mrb[10].mxu0 %vm34_vm0, %v28_v19 }
  0x1a   :  { %425 = vmatprep.mubr.msk.f32.mxu0 %vm34_vm0, %v29_v20 }
  0x1c   :  { %481 = vmatpush3.bf16.xpose.msk.msra.mxu1 %vm563_vm1, %v479_v18 }
  0x1d   :  { %482 = vmatprep.subr.bf16.mxu1 %v526_v2  ;;  %426 = vmatmul.mubr.msk.f32.gmra.mrb[12].mxu0 %vm34_vm0, %v30_v21 }
  0x1e   :  { %428 = vmatprep.mubr.msk.f32.mxu0 %vm34_vm0, %v31_v22 }
  0x21   :  { %429 = vmatmul.mubr.msk.f32.gmra.mrb[14].mxu0 %vm34_vm0, %v32_v24 }
  0x24   :  { %485 = vmatpush3.bf16.xpose.msk.msra.mxu1 %vm563_vm1, %v483_v23 }
  0x25   :  { %486 = vmatprep.subr.bf16.mxu1 %v526_v2 }
  0x2c   :  { %489 = vmatpush3.bf16.xpose.msk.msra.mxu1 %vm563_vm1, %v487_v25 }
  0x2d   :  { %490 = vmatprep.subr.bf16.mxu1 %v526_v2 }
  0x34   :  { %493 = vmatpush3.bf16.xpose.msk.msra.mxu1 %vm563_vm1, %v491_v26 }
  0x35   :  { %494 = vmatprep.subr.bf16.mxu1 %v526_v2 }
  0x3c   :  { %497 = vmatpush3.bf16.xpose.msk.msra.mxu1 %vm563_vm1, %v495_v27 }
  0x43   :  { %464 = vmatmul.mubr.msk.f32.vlgmr.msra.gmra.mrb[0].mxu1 %vm34_vm0, %v245_v28 }
  0xd8   :  { %v409_v29 = vpop.f32.mrb[0].mxu0 }
  0xd9   :  { %230 = vst.msk [vmem:[%s727_s3 + $0x8] sm:$0xff] %vm228_vm3, %v409_v29  ;;  %v149_v30 = vpop.f32.mrb[1].mxu0 }
  0xda   :  { %229 = vst.msk [vmem:[%s727_s3] sm:$0xff] %vm228_vm3, %v149_v30 }
  0xdc   :  { %v412_v31 = vpop.f32.mrb[2].mxu0 }
  0xdd   :  { %232 = vst.msk [vmem:[%s727_s3 + $0x18] sm:$0xff] %vm228_vm3, %v412_v31  ;;  %v159_v32 = vpop.f32.mrb[3].mxu0 }
  0xde   :  { %231 = vst.msk [vmem:[%s727_s3 + $0x10] sm:$0xff] %vm228_vm3, %v159_v32 }
  0xe0   :  { %v415_v33 = vpop.f32.mrb[4].mxu0 }
  0xe1   :  { %234 = vst.msk [vmem:[%s727_s3 + $0x28] sm:$0xff] %vm228_vm3, %v415_v33  ;;  %v169_v34 = vpop.f32.mrb[5].mxu0 }
  0xe2   :  { %233 = vst.msk [vmem:[%s727_s3 + $0x20] sm:$0xff] %vm228_vm3, %v169_v34 }
  0xe4   :  { %v418_v35 = vpop.f32.mrb[6].mxu0 }
  0xe5   :  { %236 = vst.msk [vmem:[%s727_s3 + $0x38] sm:$0xff] %vm228_vm3, %v418_v35  ;;  %v179_v36 = vpop.f32.mrb[7].mxu0 }
  0xe6   :  { %235 = vst.msk [vmem:[%s727_s3 + $0x30] sm:$0xff] %vm228_vm3, %v179_v36 }
  0xe8   :  { %v421_v37 = vpop.f32.mrb[8].mxu0 }
  0xe9   :  { %238 = vst.msk [vmem:[%s727_s3 + $0x48] sm:$0xff] %vm228_vm3, %v421_v37  ;;  %v189_v38 = vpop.f32.mrb[9].mxu0 }
  0xea   :  { %237 = vst.msk [vmem:[%s727_s3 + $0x40] sm:$0xff] %vm228_vm3, %v189_v38 }
  0xec   :  { %v424_v39 = vpop.f32.mrb[10].mxu0 }
  0xed   :  { %240 = vst.msk [vmem:[%s727_s3 + $0x58] sm:$0xff] %vm228_vm3, %v424_v39  ;;  %v199_v40 = vpop.f32.mrb[11].mxu0 }
  0xee   :  { %239 = vst.msk [vmem:[%s727_s3 + $0x50] sm:$0xff] %vm228_vm3, %v199_v40 }
  0xf0   :  { %v427_v41 = vpop.f32.mrb[12].mxu0 }
  0xf1   :  { %242 = vst.msk [vmem:[%s727_s3 + $0x68] sm:$0xff] %vm228_vm3, %v427_v41  ;;  %v209_v42 = vpop.f32.mrb[13].mxu0 }
  0xf2   :  { %241 = vst.msk [vmem:[%s727_s3 + $0x60] sm:$0xff] %vm228_vm3, %v209_v42 }
  0xf4   :  { %v430_v43 = vpop.f32.mrb[14].mxu0 }
  0xf5   :  { %244 = vst.msk [vmem:[%s727_s3 + $0x78] sm:$0xff] %vm228_vm3, %v430_v43  ;;  %v219_v44 = vpop.f32.mrb[15].mxu0 }
  0xf6   :  { %243 = vst.msk [vmem:[%s727_s3 + $0x70] sm:$0xff] %vm228_vm3, %v219_v44 }
 0x116   :  { %v315_v45 = vpop.f32.mrb[0].mxu1 }
 0x117   :  { %319 = vst [vmem:[#allocation2] sm:$0x1] %v315_v45  ;;  %v465_v46 = vpop.f32.mrb[1].mxu1 }
 0x118   :  { %513 = shalt.err (!%p510_p4)
}
 0x119   :  { %s514_s30 = scalar_lea.hbm %s728_s4, 16 }
 0x11a   :  { %p515_p5 = scmp.ne.s32.totalorder %s728_s4, %s514_s30  ;;  %p518_p6 = scmp.lt.u32.totalorder %s514_s30, %s728_s4 }
 0x11c   :  { %p520_p7 = pnand %p518_p6, %p515_p5 }
 0x11e   :  { %523 = shalt.err (!%p520_p7)
}
 0x11f   :  { %331 = dma.vmem_to_hbm [thread:$0]  %s329_s1, 16, %s728_s4, [#allocation3]  }
 0x120   :  { %524 = dma.done.wait [#allocation3], 16  }
 0x121   :  { %525 = vsyncadd [#allocation3], 4294967280 }
 0x122   :  { %337 = vsyncpa [#allocation3], 1 }

</bundles_post_ra>
